<compile_context>
chip_gen: v5e
topology: v5e:2x2
jax: 0.10.0
libtpu: 0.0.40
codegen_flags: <defaults>
</compile_context>

<pallas_src>
import functools

import jax
import jax.numpy as jnp
from jax.experimental import pallas as pl
from jax.experimental.pallas import tpu as pltpu


def _attn_kernel(g_ref, x_ref, wg_ref, wx_ref, bsum_ref, wpsi_ref, bpsi_ref,
                 o_ref):
    wg = wg_ref[...]                       # (F_int, F_g)
    wx = wx_ref[...]                       # (F_int, F_l)
    bsum = bsum_ref[...]                   # (F_int, 1)  f32
    wpsi = wpsi_ref[...]                   # (F_int, 1)  f32
    bpsi = bpsi_ref[0]                     # scalar in SMEM

    nb, _, t = g_ref.shape
    fint, fg = wg.shape
    fl = wx.shape[1]

    tiny_k = (fg <= 16) and (fl <= 16)     # static (trace-time) decision
    if tiny_k:
        # Hoist weight casts / bias broadcast out of the (unrolled) loops.
        wgf = wg.astype(jnp.float32)
        wxf = wx.astype(jnp.float32)
        h0 = jnp.broadcast_to(bsum, (fint, t))

    for b in range(nb):                    # nb is small & static: unrolled
        g = g_ref[b]                       # (F_g, T), lane-dense
        x = x_ref[b]                       # (F_l, T)
        if tiny_k:
            # Tiny contraction dims: unrolled VPU FMAs (exact f32), no MXU
            # push/drain latency for an 8x4-sized matmul.
            gf = g.astype(jnp.float32)
            xf = x.astype(jnp.float32)
            h = h0
            for c in range(fg):
                h = h + wgf[:, c:c + 1] * gf[c:c + 1, :]
            for c in range(fl):
                h = h + wxf[:, c:c + 1] * xf[c:c + 1, :]
        else:
            h = jnp.dot(wg, g, preferred_element_type=jnp.float32)
            h = h + jnp.dot(wx, x, preferred_element_type=jnp.float32)
            h = h + bsum
        h = jnp.maximum(h, 0.0)            # (F_int, T)

        # psi projection (output dim 1): sublane reduction on VPU/XLU instead
        # of a degenerate M=1 MXU matmul.
        p = jnp.sum(h * wpsi, axis=0, keepdims=True) + bpsi
        psi = jax.nn.sigmoid(p)            # (1, T), lane-dense
        o_ref[b] = (x * psi.astype(x.dtype)).astype(o_ref.dtype)


def _choose_tiles(N, Fg, Fl, Fint, HW, act_bytes, target_block_bytes):
    """Pick (batch-block, pixel-tile) from a VMEM byte budget."""
    # Streamed bytes per pixel per batch slot: g + x reads, out write (act
    # dtype) plus the f32 intermediate h.
    per_lane = (Fg + 2 * Fl) * act_bytes + Fint * 4
    lane_budget = max(128, target_block_bytes // per_lane)

    if HW > lane_budget:
        tile_hw = max(256, (lane_budget // 256) * 256)   # lane-dense, mult of 128
        nb = 1
    else:
        tile_hw = HW                                     # whole pixel row per step
        nb = max(1, min(N, int(lane_budget // max(HW, 1))))
    while N % nb:                                        # keep batch blocks exact
        nb -= 1

    def _steps(nb_, t_):
        return pl.cdiv(N, nb_) * pl.cdiv(HW, t_)

    # Guarantee >= 2 grid steps (when shapes allow) so both v7x TensorCores
    # get work; v5e/v6e are unaffected.
    while _steps(nb, tile_hw) < 2:
        if nb > 1:
            nb = max(1, nb // 2)
            while N % nb:
                nb -= 1
        elif tile_hw > 128 and HW > 128:
            tile_hw = max(128, ((tile_hw // 2) // 128) * 128)
        else:
            break
    return nb, tile_hw


def attention_block_pallas(g3, x3, wg_t, wx_t, b_sum, wpsi_col, bpsi1,
                           *, target_block_bytes=2 << 20):
    """g3: (N, F_g, HW), x3: (N, F_l, HW) -> (N, F_l, HW)."""
    N, Fg, HW = g3.shape
    _, Fl, _ = x3.shape
    Fint = wg_t.shape[0]
    act_bytes = jnp.dtype(x3.dtype).itemsize

    nb, tile_hw = _choose_tiles(N, Fg, Fl, Fint, HW, act_bytes,
                                target_block_bytes)
    grid = (pl.cdiv(N, nb), pl.cdiv(HW, tile_hw))

    # Per-step VMEM working set: double-buffered streamed blocks (g, x, out),
    # f32 h intermediate, resident weights.  Set the scoped limit explicitly
    # (kept well under v7x's 64 MiB physical).
    vmem_need = (2 * nb * (Fg + 2 * Fl) * tile_hw * act_bytes
                 + nb * Fint * tile_hw * 4
                 + Fint * (Fg + Fl + 2) * 4)
    vmem_limit = int(max(32 << 20, min(48 << 20, 2 * vmem_need)))

    return pl.pallas_call(
        _attn_kernel,
        out_shape=jax.ShapeDtypeStruct((N, Fl, HW), x3.dtype),
        grid_spec=pltpu.PrefetchScalarGridSpec(
            num_scalar_prefetch=0,
            grid=grid,
            in_specs=[
                pl.BlockSpec((nb, Fg, tile_hw), lambda n, j: (n, 0, j)),   # g
                pl.BlockSpec((nb, Fl, tile_hw), lambda n, j: (n, 0, j)),   # x
                pl.BlockSpec((Fint, Fg), lambda n, j: (0, 0)),             # Wg^T
                pl.BlockSpec((Fint, Fl), lambda n, j: (0, 0)),             # Wx^T
                pl.BlockSpec((Fint, 1), lambda n, j: (0, 0)),              # bg+bx
                pl.BlockSpec((Fint, 1), lambda n, j: (0, 0)),              # Wpsi
                pl.BlockSpec(memory_space=pltpu.MemorySpace.SMEM),         # bpsi
            ],
            out_specs=pl.BlockSpec((nb, Fl, tile_hw), lambda n, j: (n, 0, j)),
        ),
        compiler_params=pltpu.CompilerParams(
            dimension_semantics=("parallel", "parallel"),
            vmem_limit_bytes=vmem_limit),
    )(g3, x3, wg_t, wx_t, b_sum, wpsi_col, bpsi1)


def _fold_bn(w, b, gamma, beta, mean, var, eps=1e-5):
    """Fold conv(1x1) + BatchNorm (inference) into effective (W, b).

    w: (Cin, Cout), b: (Cout,), BN params: (Cout,)."""
    a = gamma / jnp.sqrt(var + eps)
    w_eff = w * a[None, :]
    b_eff = a * b + (beta - a * mean)
    return w_eff, b_eff


def attention_block(g_nchw, x_nchw, params, *, act_dtype=None):
    """NCHW wrapper around the Pallas kernel (no layout transposes)."""
    N, Fg, H, W = g_nchw.shape
    _, Fl, _, _ = x_nchw.shape
    Fint = params["wg"].shape[1]

    # Fold BN into conv weights (plain-JAX glue), pre-sum the branch biases.
    wg_eff, bg_eff = _fold_bn(params["wg"], params["bg"], params["bn_g_gamma"],
                              params["bn_g_beta"], params["bn_g_mean"],
                              params["bn_g_var"])
    wx_eff, bx_eff = _fold_bn(params["wx"], params["bx"], params["bn_x_gamma"],
                              params["bn_x_beta"], params["bn_x_mean"],
                              params["bn_x_var"])
    wpsi_eff, bpsi_eff = _fold_bn(params["wpsi"], params["bpsi"],
                                  params["bn_p_gamma"], params["bn_p_beta"],
                                  params["bn_p_mean"], params["bn_p_var"])

    wg_t = wg_eff.T                                  # (F_int, F_g)
    wx_t = wx_eff.T                                  # (F_int, F_l)
    b_sum = (bg_eff + bx_eff).reshape(Fint, 1).astype(jnp.float32)
    wpsi_col = wpsi_eff.reshape(Fint, 1).astype(jnp.float32)
    bpsi1 = bpsi_eff.reshape(1).astype(jnp.float32)

    # NCHW -> (N, C, H*W): pure reshape, channel-major, pixels on lanes.
    g3 = g_nchw.reshape(N, Fg, H * W)
    x3 = x_nchw.reshape(N, Fl, H * W)

    if act_dtype is not None:
        g3 = g3.astype(act_dtype)
        x3 = x3.astype(act_dtype)
        wg_t = wg_t.astype(act_dtype)
        wx_t = wx_t.astype(act_dtype)

    out3 = attention_block_pallas(g3, x3, wg_t, wx_t, b_sum, wpsi_col, bpsi1)
    return out3.reshape(N, Fl, H, W)


def _reference(g_nchw, x_nchw, params):
    """Plain-JAX reference (inference-mode BN) for verification."""
    hi = jax.lax.Precision.HIGHEST

    def conv_bn(x, w, b, gamma, beta, mean, var, eps=1e-5):
        y = jnp.einsum("nchw,co->nohw", x, w, precision=hi) \
            + b[None, :, None, None]
        a = gamma / jnp.sqrt(var + eps)
        return a[None, :, None, None] * (y - mean[None, :, None, None]) \
            + beta[None, :, None, None]

    g1 = conv_bn(g_nchw, params["wg"], params["bg"], params["bn_g_gamma"],
                 params["bn_g_beta"], params["bn_g_mean"], params["bn_g_var"])
    x1 = conv_bn(x_nchw, params["wx"], params["bx"], params["bn_x_gamma"],
                 params["bn_x_beta"], params["bn_x_mean"], params["bn_x_var"])
    h = jnp.maximum(g1 + x1, 0.0)
    p = conv_bn(h, params["wpsi"], params["bpsi"], params["bn_p_gamma"],
                params["bn_p_beta"], params["bn_p_mean"], params["bn_p_var"])
    psi = jax.nn.sigmoid(p)
    return x_nchw * psi


def make_params(key, F_g, F_l, F_int):
    ks = jax.random.split(key, 8)
    return {
        "wg": jax.random.normal(ks[0], (F_g, F_int), jnp.float32) * 0.2,
        "bg": jax.random.normal(ks[1], (F_int,), jnp.float32) * 0.1,
        "wx": jax.random.normal(ks[2], (F_l, F_int), jnp.float32) * 0.2,
        "bx": jax.random.normal(ks[3], (F_int,), jnp.float32) * 0.1,
        "wpsi": jax.random.normal(ks[4], (F_int, 1), jnp.float32) * 0.2,
        "bpsi": jax.random.normal(ks[5], (1,), jnp.float32) * 0.1,
        # BatchNorm (inference-mode) parameters
        "bn_g_gamma": jnp.ones((F_int,), jnp.float32) * 1.1,
        "bn_g_beta": jnp.full((F_int,), 0.05, jnp.float32),
        "bn_g_mean": jnp.full((F_int,), 0.02, jnp.float32),
        "bn_g_var": jnp.full((F_int,), 0.9, jnp.float32),
        "bn_x_gamma": jnp.ones((F_int,), jnp.float32) * 0.95,
        "bn_x_beta": jnp.full((F_int,), -0.03, jnp.float32),
        "bn_x_mean": jnp.full((F_int,), -0.01, jnp.float32),
        "bn_x_var": jnp.full((F_int,), 1.1, jnp.float32),
        "bn_p_gamma": jnp.ones((1,), jnp.float32) * 1.05,
        "bn_p_beta": jnp.full((1,), 0.02, jnp.float32),
        "bn_p_mean": jnp.full((1,), 0.01, jnp.float32),
        "bn_p_var": jnp.full((1,), 1.05, jnp.float32),
    }


if __name__ == "__main__":
    # Small shapes consistent with Attention_block: F_g = F_l = 4, F_int = 8.
    N, C, H, W = 2, 4, 16, 16
    F_int = 8

    key = jax.random.PRNGKey(0)
    kg, kx, kp = jax.random.split(key, 3)
    g = jax.random.normal(kg, (N, C, H, W), jnp.float32)
    x = jax.random.normal(kx, (N, C, H, W), jnp.float32)
    params = make_params(kp, C, C, F_int)

    ref = _reference(g, x, params)

    # f32 path (matches the PyTorch module's default dtype).
    out = jax.block_until_ready(jax.jit(attention_block)(g, x, params))
    assert out.shape == (N, C, H, W)
    assert jnp.allclose(out, ref, atol=1e-5, rtol=1e-5), "f32 mismatch vs ref"

    # bf16-activation path (halves HBM traffic; looser tolerance vs f32 ref).
    fwd_bf16 = jax.jit(functools.partial(attention_block,
                                         act_dtype=jnp.bfloat16))
    out_bf16 = jax.block_until_ready(fwd_bf16(g, x, params))
    assert out_bf16.dtype == jnp.bfloat16
    assert jnp.allclose(out_bf16.astype(jnp.float32), ref,
                        atol=5e-2, rtol=5e-2), "bf16 mismatch vs ref"

    print("KERNEL_OK")
</pallas_src>

<mosaic_0001>
module attributes {stable_mosaic.version = 11 : i64} {
  func.func @_attn_kernel(%arg0: i32, %arg1: i32, %arg2: memref<1x4x256xf32, #tpu.memory_space<vmem>>, %arg3: memref<1x4x256xf32, #tpu.memory_space<vmem>>, %arg4: memref<8x4xf32, #tpu.memory_space<vmem>>, %arg5: memref<8x4xf32, #tpu.memory_space<vmem>>, %arg6: memref<8x1xf32, #tpu.memory_space<vmem>>, %arg7: memref<8x1xf32, #tpu.memory_space<vmem>>, %arg8: memref<1xf32, #tpu.memory_space<smem>>, %arg9: memref<1x4x256xf32, #tpu.memory_space<vmem>>) attributes {dimension_semantics = [#tpu.dimension_semantics<parallel>, #tpu.dimension_semantics<parallel>], iteration_bounds = array<i64: 2, 1>, scalar_prefetch = 0 : i64, scratch_operands = 0 : i64, tpu.core_type = #tpu.core_type<tc>, window_params = [{transform_indices = @transform_0, window_bounds = array<i64: 1, 4, 256>}, {transform_indices = @transform_1, window_bounds = array<i64: 1, 4, 256>}, {pipeline_mode = #tpu.pipeline_mode<synchronous>, transform_indices = @transform_2, window_bounds = array<i64: 8, 4>}, {pipeline_mode = #tpu.pipeline_mode<synchronous>, transform_indices = @transform_3, window_bounds = array<i64: 8, 4>}, {pipeline_mode = #tpu.pipeline_mode<synchronous>, transform_indices = @transform_4, window_bounds = array<i64: 8, 1>}, {pipeline_mode = #tpu.pipeline_mode<synchronous>, transform_indices = @transform_5, window_bounds = array<i64: 8, 1>}, {transform_indices = @transform_6, window_bounds = array<i64: 1>}, {transform_indices = @transform_7, window_bounds = array<i64: 1, 4, 256>}]} {
    %c0 = arith.constant 0 : index
    %c0_0 = arith.constant 0 : index
    %0 = vector.load %arg4[%c0, %c0_0] : memref<8x4xf32, #tpu.memory_space<vmem>>, vector<8x4xf32>
    %c0_1 = arith.constant 0 : index
    %c0_2 = arith.constant 0 : index
    %1 = vector.load %arg5[%c0_1, %c0_2] : memref<8x4xf32, #tpu.memory_space<vmem>>, vector<8x4xf32>
    %c0_3 = arith.constant 0 : index
    %c0_4 = arith.constant 0 : index
    %2 = vector.load %arg6[%c0_3, %c0_4] : memref<8x1xf32, #tpu.memory_space<vmem>>, vector<8x1xf32>
    %c0_5 = arith.constant 0 : index
    %c0_6 = arith.constant 0 : index
    %3 = vector.load %arg7[%c0_5, %c0_6] : memref<8x1xf32, #tpu.memory_space<vmem>>, vector<8x1xf32>
    %c0_7 = arith.constant 0 : index
    %4 = memref.load %arg8[%c0_7] : memref<1xf32, #tpu.memory_space<smem>>
    %5 = vector.shape_cast %2 : vector<8x1xf32> to vector<8x1xf32>
    %6 = vector.broadcast %5 : vector<8x1xf32> to vector<8x256xf32>
    %c0_8 = arith.constant 0 : index
    %c0_9 = arith.constant 0 : index
    %c0_10 = arith.constant 0 : index
    %7 = vector.load %arg2[%c0_8, %c0_9, %c0_10] : memref<1x4x256xf32, #tpu.memory_space<vmem>>, vector<1x4x256xf32>
    %8 = vector.shape_cast %7 : vector<1x4x256xf32> to vector<4x256xf32>
    %c0_11 = arith.constant 0 : index
    %c0_12 = arith.constant 0 : index
    %c0_13 = arith.constant 0 : index
    %9 = vector.load %arg3[%c0_11, %c0_12, %c0_13] : memref<1x4x256xf32, #tpu.memory_space<vmem>>, vector<1x4x256xf32>
    %10 = vector.shape_cast %9 : vector<1x4x256xf32> to vector<4x256xf32>
    %11 = vector.extract_strided_slice %0 {offsets = [0, 0], sizes = [8, 1], strides = [1, 1]} : vector<8x4xf32> to vector<8x1xf32>
    %12 = vector.extract_strided_slice %8 {offsets = [0, 0], sizes = [1, 256], strides = [1, 1]} : vector<4x256xf32> to vector<1x256xf32>
    %13 = vector.broadcast %11 : vector<8x1xf32> to vector<8x256xf32>
    %14 = vector.broadcast %12 : vector<1x256xf32> to vector<8x256xf32>
    %15 = arith.mulf %13, %14 : vector<8x256xf32>
    %16 = arith.addf %6, %15 : vector<8x256xf32>
    %17 = vector.extract_strided_slice %0 {offsets = [0, 1], sizes = [8, 1], strides = [1, 1]} : vector<8x4xf32> to vector<8x1xf32>
    %18 = vector.extract_strided_slice %8 {offsets = [1, 0], sizes = [1, 256], strides = [1, 1]} : vector<4x256xf32> to vector<1x256xf32>
    %19 = vector.broadcast %17 : vector<8x1xf32> to vector<8x256xf32>
    %20 = vector.broadcast %18 : vector<1x256xf32> to vector<8x256xf32>
    %21 = arith.mulf %19, %20 : vector<8x256xf32>
    %22 = arith.addf %16, %21 : vector<8x256xf32>
    %23 = vector.extract_strided_slice %0 {offsets = [0, 2], sizes = [8, 1], strides = [1, 1]} : vector<8x4xf32> to vector<8x1xf32>
    %24 = vector.extract_strided_slice %8 {offsets = [2, 0], sizes = [1, 256], strides = [1, 1]} : vector<4x256xf32> to vector<1x256xf32>
    %25 = vector.broadcast %23 : vector<8x1xf32> to vector<8x256xf32>
    %26 = vector.broadcast %24 : vector<1x256xf32> to vector<8x256xf32>
    %27 = arith.mulf %25, %26 : vector<8x256xf32>
    %28 = arith.addf %22, %27 : vector<8x256xf32>
    %29 = vector.extract_strided_slice %0 {offsets = [0, 3], sizes = [8, 1], strides = [1, 1]} : vector<8x4xf32> to vector<8x1xf32>
    %30 = vector.extract_strided_slice %8 {offsets = [3, 0], sizes = [1, 256], strides = [1, 1]} : vector<4x256xf32> to vector<1x256xf32>
    %31 = vector.broadcast %29 : vector<8x1xf32> to vector<8x256xf32>
    %32 = vector.broadcast %30 : vector<1x256xf32> to vector<8x256xf32>
    %33 = arith.mulf %31, %32 : vector<8x256xf32>
    %34 = arith.addf %28, %33 : vector<8x256xf32>
    %35 = vector.extract_strided_slice %1 {offsets = [0, 0], sizes = [8, 1], strides = [1, 1]} : vector<8x4xf32> to vector<8x1xf32>
    %36 = vector.extract_strided_slice %10 {offsets = [0, 0], sizes = [1, 256], strides = [1, 1]} : vector<4x256xf32> to vector<1x256xf32>
    %37 = vector.broadcast %35 : vector<8x1xf32> to vector<8x256xf32>
    %38 = vector.broadcast %36 : vector<1x256xf32> to vector<8x256xf32>
    %39 = arith.mulf %37, %38 : vector<8x256xf32>
    %40 = arith.addf %34, %39 : vector<8x256xf32>
    %41 = vector.extract_strided_slice %1 {offsets = [0, 1], sizes = [8, 1], strides = [1, 1]} : vector<8x4xf32> to vector<8x1xf32>
    %42 = vector.extract_strided_slice %10 {offsets = [1, 0], sizes = [1, 256], strides = [1, 1]} : vector<4x256xf32> to vector<1x256xf32>
    %43 = vector.broadcast %41 : vector<8x1xf32> to vector<8x256xf32>
    %44 = vector.broadcast %42 : vector<1x256xf32> to vector<8x256xf32>
    %45 = arith.mulf %43, %44 : vector<8x256xf32>
    %46 = arith.addf %40, %45 : vector<8x256xf32>
    %47 = vector.extract_strided_slice %1 {offsets = [0, 2], sizes = [8, 1], strides = [1, 1]} : vector<8x4xf32> to vector<8x1xf32>
    %48 = vector.extract_strided_slice %10 {offsets = [2, 0], sizes = [1, 256], strides = [1, 1]} : vector<4x256xf32> to vector<1x256xf32>
    %49 = vector.broadcast %47 : vector<8x1xf32> to vector<8x256xf32>
    %50 = vector.broadcast %48 : vector<1x256xf32> to vector<8x256xf32>
    %51 = arith.mulf %49, %50 : vector<8x256xf32>
    %52 = arith.addf %46, %51 : vector<8x256xf32>
    %53 = vector.extract_strided_slice %1 {offsets = [0, 3], sizes = [8, 1], strides = [1, 1]} : vector<8x4xf32> to vector<8x1xf32>
    %54 = vector.extract_strided_slice %10 {offsets = [3, 0], sizes = [1, 256], strides = [1, 1]} : vector<4x256xf32> to vector<1x256xf32>
    %55 = vector.broadcast %53 : vector<8x1xf32> to vector<8x256xf32>
    %56 = vector.broadcast %54 : vector<1x256xf32> to vector<8x256xf32>
    %57 = arith.mulf %55, %56 : vector<8x256xf32>
    %58 = arith.addf %52, %57 : vector<8x256xf32>
    %cst = arith.constant 0.000000e+00 : f32
    %59 = vector.broadcast %cst : f32 to vector<8x256xf32>
    %60 = arith.maximumf %58, %59 : vector<8x256xf32>
    %61 = vector.broadcast %3 : vector<8x1xf32> to vector<8x256xf32>
    %62 = arith.mulf %60, %61 : vector<8x256xf32>
    %cst_14 = arith.constant dense<0.000000e+00> : vector<256xf32>
    %63 = vector.multi_reduction <add>, %62, %cst_14 [0] : vector<8x256xf32> to vector<256xf32>
    %64 = vector.shape_cast %63 : vector<256xf32> to vector<1x256xf32>
    %65 = vector.broadcast %4 : f32 to vector<1x256xf32>
    %66 = arith.addf %64, %65 : vector<1x256xf32>
    %67 = arith.negf %66 : vector<1x256xf32>
    %68 = math.exp %67 : vector<1x256xf32>
    %cst_15 = arith.constant 1.000000e+00 : f32
    %69 = vector.broadcast %cst_15 : f32 to vector<1x256xf32>
    %70 = arith.addf %69, %68 : vector<1x256xf32>
    %71 = arith.divf %69, %70 : vector<1x256xf32>
    %72 = vector.broadcast %71 : vector<1x256xf32> to vector<4x256xf32>
    %73 = arith.mulf %10, %72 : vector<4x256xf32>
    %c0_16 = arith.constant 0 : index
    %c0_17 = arith.constant 0 : index
    %c0_18 = arith.constant 0 : index
    %74 = vector.load %arg9[%c0_16, %c0_17, %c0_18] : memref<1x4x256xf32, #tpu.memory_space<vmem>>, vector<1x4x256xf32>
    %75 = vector.shape_cast %74 : vector<1x4x256xf32> to vector<4x256xf32>
    %76 = vector.shape_cast %73 : vector<4x256xf32> to vector<1x4x256xf32>
    tpu.vector_store %arg9[%c0_16, %c0_17, %c0_18], %76 {strides = array<i32>} : memref<1x4x256xf32, #tpu.memory_space<vmem>>, vector<1x4x256xf32>,
    return
  }
  func.func @transform_0(%arg0: i32, %arg1: i32) -> (i32, i32, i32) {
    %c0_i32 = arith.constant 0 : i32
    %c0_i32_0 = arith.constant 0 : i32
    return %arg0, %c0_i32, %arg1 : i32, i32, i32
  }
  func.func @transform_1(%arg0: i32, %arg1: i32) -> (i32, i32, i32) {
    %c0_i32 = arith.constant 0 : i32
    %c0_i32_0 = arith.constant 0 : i32
    return %arg0, %c0_i32, %arg1 : i32, i32, i32
  }
  func.func @transform_2(%arg0: i32, %arg1: i32) -> (i32, i32) {
    %c0_i32 = arith.constant 0 : i32
    %c0_i32_0 = arith.constant 0 : i32
    %c0_i32_1 = arith.constant 0 : i32
    return %c0_i32, %c0_i32_0 : i32, i32
  }
  func.func @transform_3(%arg0: i32, %arg1: i32) -> (i32, i32) {
    %c0_i32 = arith.constant 0 : i32
    %c0_i32_0 = arith.constant 0 : i32
    %c0_i32_1 = arith.constant 0 : i32
    return %c0_i32, %c0_i32_0 : i32, i32
  }
  func.func @transform_4(%arg0: i32, %arg1: i32) -> (i32, i32) {
    %c0_i32 = arith.constant 0 : i32
    %c0_i32_0 = arith.constant 0 : i32
    %c0_i32_1 = arith.constant 0 : i32
    return %c0_i32, %c0_i32_0 : i32, i32
  }
  func.func @transform_5(%arg0: i32, %arg1: i32) -> (i32, i32) {
    %c0_i32 = arith.constant 0 : i32
    %c0_i32_0 = arith.constant 0 : i32
    %c0_i32_1 = arith.constant 0 : i32
    return %c0_i32, %c0_i32_0 : i32, i32
  }
  func.func @transform_6(%arg0: i32, %arg1: i32) -> i32 {
    %c0_i32 = arith.constant 0 : i32
    %c0_i32_0 = arith.constant 0 : i32
    return %c0_i32 : i32
  }
  func.func @transform_7(%arg0: i32, %arg1: i32) -> (i32, i32, i32) {
    %c0_i32 = arith.constant 0 : i32
    %c0_i32_0 = arith.constant 0 : i32
    return %arg0, %c0_i32, %arg1 : i32, i32, i32
  }
}

</mosaic_0001>

<bundles_post_ra>
// kernel: attention_block.1
= control target key start
LH: loop header
LB: loop body
LE: loop exit
PB: predicated region body
PF: predicated region fallthrough
CT: control target
= control target key end

     0   :  { %s792_s26 = smov 0   ;;  %s794_s27 = smov 0   ;;  %s860_s0 = inlined_call_operand.vmem [shape: f32[2,4,256], index: 0, kind: input, shape index: {}]   ;;  %s861_s1 = inlined_call_operand.vmem [shape: f32[2,4,256], index: 1, kind: input, shape index: {}]   ;;  %s862_s2 = inlined_call_operand.vmem [shape: f32[8,4], index: 2, kind: input, shape index: {}]   ;;  %s863_s3 = inlined_call_operand.vmem [shape: f32[8,4], index: 3, kind: input, shape index: {}]   ;;  %s864_s4 = inlined_call_operand.vmem [shape: f32[8,1], index: 4, kind: input, shape index: {}]   ;;  %s865_s5 = inlined_call_operand.vmem [shape: f32[8,1], index: 5, kind: input, shape index: {}]   ;;  %s866_s6 = inlined_call_operand.<no memory space> [shape: f32[1], index: 6, kind: input, shape index: {}]   ;;  %s867_s7 = inlined_call_operand.vmem [shape: f32[2,4,256], index: 7, kind: output, shape index: {}]  }
   0x1   :  { %12 = sst [smem:[#allocation2]] %s866_s6  ;;  %s796_s28 = smov 0  }
   0x2 LB: > { %s30_s6 = sadd.s32 1, %s739_s27  ;;  %p662_p0 = scmp.ge.s32.totalorder %s743_s28, 1  ;;  %s743_s28 = sphi %s796_s28, %s18_s28   ;;  %s739_s27 = sphi %s794_s27, %s869_s27   ;;  %s735_s26 = sphi %s792_s26, %s868_s26  }
   0x3   : > { %p32_p1 = scmp.ge.s32.totalorder %s30_s6, 2  ;;  %p276_p2 = scmp.lt.s32.totalorder %s743_s28, 3 }
   0x5   : > { %s871_s6 = smov (%p32_p1, %s30_s6), 0  ;;  %p277_p3 = pnand %p662_p0, %p276_p2 }
   0x6   : > { %p326_p4 = scmp.lt.s32.totalorder (!%p277_p3), %s735_s26, 1  ;;  %s359_s21 = sld [smem:[#allocation2]] (!%p277_p3) }
   0x7   : > { %280 = sbr.rel (%p277_p3) target bundleno = 207 (0xcf), region = 48 }
   0xc   : > { %v355_v0 = vld [vmem:[%s862_s2] sm:$0xff]  ;;  %v745_v1 = vmov 1   ;;  %v746_v2 = vmov 0   ;;  %v747_v3 = vmov 3   ;;  %v748_v5 = vmov 2   ;;  %s873_s26 = smov (!%p326_p4, %s735_s26), 1 }
   0xd   : > { %705 = vset.pattern.permute.xlu1 %v745_v1  ;;  %704 = vset.pattern.permute.xlu0 %v746_v2  ;;  %v357_v4 = vld [vmem:[%s864_s4] sm:$0xff]  ;;  %s826_s14 = sshll.u32 %s873_s26, 3  ;;  %vm548_vm7 = vcmask 1043456  }
   0xe   : > { %384 = vperm.xlu1 %705, %v355_v0   ;;  %369 = vperm.xlu0 %704, %v355_v0   ;;  %v356_v6 = vld [vmem:[%s863_s3] sm:$0xff]  ;;  %s333_s17 = scalar_lea.vmem %s860_s0, %s826_s14  ;;  %s343_s20 = scalar_lea.vmem %s861_s1, %s826_s14 }
   0xf   : > { %707 = vset.pattern.permute.xlu2 %v747_v3  ;;  %v358_v7 = vld [vmem:[%s865_s5] sm:$0xff]  ;;  %s353_s24 = scalar_lea.vmem %s867_s7, %s826_s14 }
  0x10   : > { %412 = vperm.xlu2 %707, %v355_v0   ;;  %v365_v8 = vld [vmem:[%s333_s17] sm:$0xff] }
  0x11   : > { %v373_v10 = vperm.slane %v365_v8, 0  ;;  %v374_v11 = vperm.slane %v365_v8, 4  ;;  %v387_v14 = vperm.slane %v365_v8, 1  ;;  %v388_v15 = vperm.slane %v365_v8, 5  ;;  %v836_v16 = vld [vmem:[%s343_s20] sm:$0xff] }
  0x12   : > { %v401_v17 = vperm.slane %v365_v8, 2  ;;  %v402_v18 = vperm.slane %v365_v8, 6  ;;  %v415_v21 = vperm.slane %v365_v8, 3  ;;  %v416_v22 = vperm.slane %v365_v8, 7 }
  0x13   : > { %v377_v19 = vperm.slane %v373_v10, 0  ;;  %v378_v20 = vperm.slane %v374_v11, 0  ;;  %v431_v23 = vperm.slane %v836_v16, 0  ;;  %v432_v24 = vperm.slane %v836_v16, 4 }
  0x14   : > { %v391_v25 = vperm.slane %v387_v14, 1  ;;  %v392_v26 = vperm.slane %v388_v15, 1  ;;  %v405_v27 = vperm.slane %v401_v17, 2  ;;  %v406_v28 = vperm.slane %v402_v18, 2 }
  0x15   : > { %v419_v32 = vperm.slane %v415_v21, 3  ;;  %v420_v33 = vperm.slane %v416_v22, 3  ;;  %v435_v35 = vperm.slane %v431_v23, 0  ;;  %v436_v36 = vperm.slane %v432_v24, 0 }
  0x16   : > { %706 = vset.pattern.permute.xlu1 %v748_v5  ;;  %362 = vperm.xlu0 %704, %v357_v4   ;;  %v445_v44 = vperm.slane %v836_v16, 1  ;;  %v446_v45 = vperm.slane %v836_v16, 5  ;;  %v473_v48 = vperm.slane %v836_v16, 3  ;;  %v474_v49 = vperm.slane %v836_v16, 7 }
  0x17   : > { %398 = vperm.xlu1 %706, %v355_v0   ;;  %v459_v50 = vperm.slane %v836_v16, 2  ;;  %v460_v51 = vperm.slane %v836_v16, 6 }
  0x18   : > { %708 = vset.pattern.permute.xlu2 %v746_v2  ;;  %v449_v58 = vperm.slane %v445_v44, 1  ;;  %v450_v59 = vperm.slane %v446_v45, 1  ;;  %v477_v62 = vperm.slane %v473_v48, 3  ;;  %v478_v63 = vperm.slane %v474_v49, 3 }
  0x19   : > { %427 = vperm.xlu2 %708, %v356_v6   ;;  %v463_v0 = vperm.slane %v459_v50, 2 }
  0x1e   : > { %709 = vset.pattern.permute.xlu0 %v745_v1  ;;  %v464_v1 = vperm.slane %v460_v51, 2 }
  0x1f   : > { %456 = vperm.xlu1 %706, %v356_v6   ;;  %442 = vperm.xlu0 %709, %v356_v6  }
  0x21   : > { %710 = vset.pattern.permute.xlu2 %v747_v3 }
  0x22   : > { %470 = vperm.xlu2 %710, %v356_v6  }
  0x27   : > { %711 = vset.pattern.permute.xlu1 %v746_v2  ;;  %712 = vset.pattern.permute.xlu0 %v746_v2 }
  0x28   : > { %487 = vperm.xlu1 %711, %v358_v7  }
  0x6a   : > { %v413_v9 = vpop.permute.xlu2 %412 }
  0x6b   : > { %v421_v52 = vmul.f32 %v419_v32, %v413_v9  ;;  %v422_v53 = vmul.f32 %v420_v33, %v413_v9 }
  0x73   : > { %v428_v29 = vpop.permute.xlu2 %427 }
  0x74   : > { %v437_v56 = vmul.f32 %v435_v35, %v428_v29  ;;  %v438_v57 = vmul.f32 %v436_v36, %v428_v29  ;;  %v504_v35 = vstv %s359_s21 }
  0x7c   : > { %v471_v2 = vpop.permute.xlu2 %470 }
  0x7d   : > { %v479_v9 = vmul.f32 %v477_v62, %v471_v2  ;;  %v480_v10 = vmul.f32 %v478_v63, %v471_v2 }
  0x80   : > { %v370_v12 = vpop.permute.xlu0 %369  ;;  %v385_v13 = vpop.permute.xlu1 %384 }
  0x81   : > { %v379_v30 = vmul.f32 %v377_v19, %v370_v12  ;;  %v380_v31 = vmul.f32 %v378_v20, %v370_v12  ;;  %v393_v37 = vmul.f32 %v391_v25, %v385_v13  ;;  %v394_v38 = vmul.f32 %v392_v26, %v385_v13 }
  0x88   : > { %v363_v34 = vpop.permute.xlu0 %362 }
  0x89   : > { %v381_v39 = vadd.f32 %v379_v30, %v363_v34  ;;  %v382_v40 = vadd.f32 %v380_v31, %v363_v34  ;;  %v399_v41 = vpop.permute.xlu1 %398 }
  0x8a   : > { %v407_v42 = vmul.f32 %v405_v27, %v399_v41  ;;  %v408_v43 = vmul.f32 %v406_v28, %v399_v41 }
  0x8b   : > { %v395_v46 = vadd.f32 %v393_v37, %v381_v39  ;;  %v396_v47 = vadd.f32 %v394_v38, %v382_v40 }
  0x8d   : > { %v409_v54 = vadd.f32 %v407_v42, %v395_v46  ;;  %v410_v55 = vadd.f32 %v408_v43, %v396_v47 }
  0x8f   : > { %v423_v60 = vadd.f32 %v421_v52, %v409_v54  ;;  %v424_v61 = vadd.f32 %v422_v53, %v410_v55 }
  0x91   : > { %v439_v3 = vadd.f32 %v437_v56, %v423_v60  ;;  %v440_v4 = vadd.f32 %v438_v57, %v424_v61  ;;  %v457_v5 = vpop.permute.xlu1 %456  ;;  %v443_v6 = vpop.permute.xlu0 %442 }
  0x92   : > { %v451_v7 = vmul.f32 %v449_v58, %v443_v6  ;;  %v452_v8 = vmul.f32 %v450_v59, %v443_v6  ;;  %v465_v11 = vmul.f32 %v463_v0, %v457_v5  ;;  %v466_v12 = vmul.f32 %v464_v1, %v457_v5 }
  0x94   : > { %v453_v13 = vadd.f32 %v451_v7, %v439_v3  ;;  %v454_v14 = vadd.f32 %v452_v8, %v440_v4 }
  0x96   : > { %v467_v15 = vadd.f32 %v465_v11, %v453_v13  ;;  %v468_v17 = vadd.f32 %v466_v12, %v454_v14 }
  0x98   : > { %v481_v18 = vadd.f32 %v479_v9, %v467_v15  ;;  %v482_v19 = vadd.f32 %v480_v10, %v468_v17 }
  0x9a   : > { %v488_v20 = vpop.permute.xlu1 %487  ;;  %v483_v21 = vmax.f32 %v481_v18, 0.0  ;;  %v484_v22 = vmax.f32 %v482_v19, 0.0 }
  0x9c   : > { %v490_v23 = vmul.f32 %v488_v20, %v483_v21  ;;  %v491_v24 = vmul.f32 %v488_v20, %v484_v22 }
  0x9e   : > { %v492_v25 = vrot.slane %v490_v23, 4  ;;  %v498_v26 = vrot.slane %v491_v24, 4 }
  0xa0   : > { %v493_v27 = vadd.f32 %v492_v25, %v490_v23  ;;  %v499_v28 = vadd.f32 %v498_v26, %v491_v24 }
  0xa2   : > { %v494_v29 = vrot.slane %v493_v27, 2  ;;  %v500_v30 = vrot.slane %v499_v28, 2 }
  0xa4   : > { %v495_v31 = vadd.f32 %v494_v29, %v493_v27  ;;  %v501_v32 = vadd.f32 %v500_v30, %v499_v28 }
  0xa6   : > { %v496_v33 = vrot.slane %v495_v31, 1  ;;  %v502_v34 = vrot.slane %v501_v32, 1 }
  0xa8   : > { %v497_v36 = vadd.f32 %v496_v33, %v495_v31  ;;  %v503_v37 = vadd.f32 %v502_v34, %v501_v32 }
  0xaa   : > { %v505_v38 = vadd.f32 %v504_v35, %v497_v36  ;;  %v506_v39 = vadd.f32 %v504_v35, %v503_v37 }
  0xac   : > { %v669_v40 = vmul.f32 -1.442695, %v505_v38  ;;  %v670_v41 = vmul.f32 -1.442695, %v506_v39 }
  0xae   : > { %713 = vpow2.f32 %v669_v40 }
  0xaf   : > { %715 = vpow2.f32 %v670_v41 }
  0xb4   : > { %v714_v42 = vpop.eup %713 }
  0xb5   : > { %v716_v43 = vpop.eup %715  ;;  %v513_v44 = vadd.f32 1.0, %v714_v42 }
  0xb6   : > { %v514_v45 = vadd.f32 1.0, %v716_v43 }
  0xb7   : > { %717 = vrcp.f32 %v513_v44  ;;  %vm520_vm2 = vweird.f32 %v513_v44  ;;  %v526_v57 = vand.u32 2147483648, %v513_v44  ;;  %v524_v58 = vand.u32 2147483647, %v513_v44 }
  0xb8   : > { %719 = vrcp.f32 %v514_v45  ;;  %v541_v53 = vand.u32 2147483648, %v514_v45  ;;  %v539_v55 = vand.u32 2147483647, %v514_v45  ;;  %vm535_vm4 = vweird.f32 %v514_v45 }
  0xb9   : > { %v527_v63 = vor.u32 1.1754944e-38, %v526_v57  ;;  %vm525_vm8 = vcmp.eq.f32.partialorder %v524_v58, 8.507059e+37 }
  0xba   : > { %v542_v60 = vor.u32 1.1754944e-38, %v541_v53  ;;  %vm540_vm6 = vcmp.eq.f32.partialorder %v539_v55, 8.507059e+37 }
  0xbd   : > { %v718_v46 = vpop.eup %717 }
  0xbe   : > { %v720_v47 = vpop.eup %719  ;;  %v516_v48 = vmul.f32 %v718_v46, %v513_v44  ;;  %vm521_vm0 = vweird.f32 %v718_v46 }
  0xbf   : > { %v531_v49 = vmul.f32 %v720_v47, %v514_v45  ;;  %vm536_vm1 = vweird.f32 %v720_v47  ;;  %vm522_vm3 = vmor %vm520_vm2, %vm521_vm0 }
  0xc0   : > { %v517_v50 = vsub.f32 1.0, %v516_v48  ;;  %vm537_vm5 = vmor %vm535_vm4, %vm536_vm1 }
  0xc1   : > { %v532_v51 = vsub.f32 1.0, %v531_v49 }
  0xc2   : > { %v518_v52 = vmul.f32 %v718_v46, %v517_v50 }
  0xc3   : > { %v533_v54 = vmul.f32 %v720_v47, %v532_v51 }
  0xc4   : > { %v519_v56 = vadd.f32 %v718_v46, %v518_v52 }
  0xc5   : > { %v534_v59 = vadd.f32 %v720_v47, %v533_v54 }
  0xc6   : > { %v523_v61 = vsel %vm522_vm3, %v718_v46, %v519_v56 }
  0xc7   : > { %v538_v62 = vsel %vm537_vm5, %v720_v47, %v534_v59  ;;  %v528_v2 = vsel %vm525_vm8, %v527_v63, %v523_v61 }
  0xc8   : > { %v543_v0 = vsel %vm540_vm6, %v542_v60, %v538_v62 }
  0xc9   : > { %v547_v1 = vrot.slane %v543_v0, 4 }
  0xcb   : > { %v549_v3 = vsel %vm548_vm7, %v528_v2, %v547_v1 }
  0xcc   : > { %v551_v4 = vmul.f32 %v549_v3, %v836_v16 }
  0xce   : > { %552 = vst [vmem:[%s353_s24] sm:$0xff] %v551_v4 }
  0xcf PF: > { %s18_s28 = sadd.s32 1, %s743_s28   ;;  %s868_s26 = smov %s739_s27 }
  0xd0   : > { %p15_p5 = scmp.ge.s32.totalorder %s18_s28, 4   ;;  %s869_s27 = smov %s871_s6 }
  0xd2   :  { %17 = sbr.rel (!%p15_p5) target bundleno = 2 (0x2), region = 81 }

</bundles_post_ra>
